<compile_context>
chip_gen: v6e
topology: v6e:2x2x1
jax: 0.10.0
libtpu: 0.0.40
codegen_flags: <defaults>
</compile_context>

<pallas_src>
import numpy as np
import jax
import jax.numpy as jnp
from jax.experimental import pallas as pl
from jax.experimental.pallas import tpu as pltpu

LN_EPS = 1e-5
LATENT = 32            # latent/out dims of every MLPNet
PACK = 4               # logical rows packed along lanes: 4 * 32 = 128 lanes
PC = 8                 # every C_in zero-padded up to one sublane group
L4 = PACK * LATENT     # 128 packed output lanes
ROW_TILE = 2048        # default row-tile (packed rows / sublanes): x 128 KiB bf16-cast,
                       # out 1 MiB f32 per buffer -> well inside scoped VMEM on all gens.


def _fused_embedder_kernel(sid_ref, x_ref, w1_ref, w2_ref, gb_ref, seg_ref, o_ref):
    """One grid step == one row tile of one stream.

    Packed layout (4 logical rows side-by-side along the 128 lanes):
      sid_ref: (T,) int32 in SMEM      tile -> stream id (used only by index_maps)
      x_ref  : (TR, PACK*PC)  f32      packed input rows (cast to bf16 here)
      w1_ref : (PACK*PC, L4)  bf16     block-diagonal first linear (no bias)
      w2_ref : (L4, 2*L4)     bf16     [W2_blockdiag | W2_blockdiag @ seg / LATENT]
                                       -> one matmul gives y and the per-row mean
      gb_ref : (2, L4)        f32      row 0 = gamma (tiled x4), row 1 = beta
      seg_ref: (L4, L4)       bf16     block-diagonal ones / LATENT (segmented E[.])
      o_ref  : (TR, L4)                packed output rows (lane-dense stores)
    """
    x = x_ref[...].astype(jnp.bfloat16)
    # Linear 1 (no bias) on MXU.
    h = jnp.dot(x, w1_ref[...], preferred_element_type=jnp.float32)
    # SiLU (sigmoid goes to the EUP slot).
    h = h * jax.nn.sigmoid(h)
    # Linear 2 fused with the LayerNorm mean reduction: z[:, :128] = y,
    # z[:, 128:] = per-logical-row mean broadcast across its 32-lane group.
    z = jnp.dot(h.astype(jnp.bfloat16), w2_ref[...],
                preferred_element_type=jnp.float32)
    y = z[:, :L4]
    mean = z[:, L4:]
    yc = y - mean
    # Segmented variance: block-diagonal (ones/LATENT) matmul sums yc^2 over each
    # 32-lane group and broadcasts it back (centered -> no cancellation issues).
    var = jnp.dot((yc * yc).astype(jnp.bfloat16), seg_ref[...],
                  preferred_element_type=jnp.float32)
    y_norm = yc * jax.lax.rsqrt(var + LN_EPS)
    gb = gb_ref[...]
    o_ref[...] = (y_norm * gb[0:1, :] + gb[1:2, :]).astype(o_ref.dtype)


def fused_embedder(tile_sid, x_all, w1, w2cat, gb, seg, *, tr, out_dtype=jnp.float32):
    """x_all: (T*tr, PACK*PC) packed rows of all streams -> (T*tr, L4)."""
    n_tiles = tile_sid.shape[0]
    rows = x_all.shape[0]
    assert tr % 8 == 0, "row tile must be a multiple of 8 sublanes"
    assert rows == n_tiles * tr
    return pl.pallas_call(
        _fused_embedder_kernel,
        out_shape=jax.ShapeDtypeStruct((rows, L4), out_dtype),
        grid_spec=pltpu.PrefetchScalarGridSpec(
            num_scalar_prefetch=1,            # tile -> stream-id table in SMEM
            grid=(n_tiles,),
            in_specs=[
                # data row tile
                pl.BlockSpec((tr, PACK * PC), lambda t, sid: (t, 0)),
                # per-stream weights: block index = stream id of this tile;
                # consecutive tiles of one stream reuse the same block (no re-DMA).
                pl.BlockSpec((None, PACK * PC, L4), lambda t, sid: (sid[t], 0, 0)),
                pl.BlockSpec((None, L4, 2 * L4), lambda t, sid: (sid[t], 0, 0)),
                pl.BlockSpec((None, 2, L4), lambda t, sid: (sid[t], 0, 0)),
                # seg matrix is stream-independent -> fully resident
                pl.BlockSpec((L4, L4), lambda t, sid: (0, 0)),
            ],
            out_specs=pl.BlockSpec((tr, L4), lambda t, sid: (t, 0)),
        ),
        compiler_params=pltpu.CompilerParams(
            dimension_semantics=("parallel",),     # tile-granular megacore sharding
            vmem_limit_bytes=48 * 1024 * 1024,     # safe on v7x (64 MiB phys) and below
        ),
    )(tile_sid, x_all, w1, w2cat, gb, seg)


# ----------------------------------------------------------------------------
# Parameter / input packing (plain JAX, done once outside the hot path).
# ----------------------------------------------------------------------------

def init_mlp_params(key, in_channels, latent_dims=LATENT):
    """Synthetic parameters (shapes match MLPNet.__init__); gamma/beta randomized
    so the affine LayerNorm path is actually exercised."""
    k1, k2, k3, k4 = jax.random.split(key, 4)
    # PyTorch Linear weight is [out, in]; we store the transpose [in, out].
    w1 = (jax.random.uniform(k1, (in_channels, latent_dims), jnp.float32,
                             minval=-1.0, maxval=1.0)
          / jnp.sqrt(jnp.float32(in_channels)))
    w2 = (jax.random.uniform(k2, (latent_dims, latent_dims), jnp.float32,
                             minval=-1.0, maxval=1.0)
          / jnp.sqrt(jnp.float32(latent_dims)))
    gamma = 1.0 + 0.1 * jax.random.normal(k3, (latent_dims,), jnp.float32)
    beta = 0.1 * jax.random.normal(k4, (latent_dims,), jnp.float32)
    return dict(w1=w1, w2=w2, gamma=gamma, beta=beta)


def pack_embedder_params(per_stream_params):
    """Stack all 5 streams into block-diagonal, lane-packed bf16 weight slabs.

    The second-linear slab also carries the folded LayerNorm-mean columns:
      w2cat = [kron(I4, W2) | kron(I4, W2) @ kron(I4, ones(32,32)) / 32].
    """
    eye = jnp.eye(PACK, dtype=jnp.float32)
    ones_seg = jnp.ones((LATENT, LATENT), jnp.float32)
    seg_blk = jnp.kron(eye, ones_seg)                          # (128, 128)
    w1s, w2s, gbs = [], [], []
    for p in per_stream_params:
        c_in = p["w1"].shape[0]
        w1p = jnp.zeros((PC, LATENT), jnp.float32).at[:c_in, :].set(p["w1"])
        w1_blk = jnp.kron(eye, w1p)                            # (32, 128)
        w2_blk = jnp.kron(eye, p["w2"])                        # (128, 128)
        w2_mean = (w2_blk @ seg_blk) / jnp.float32(LATENT)     # mean columns
        w2cat = jnp.concatenate([w2_blk, w2_mean], axis=1)     # (128, 256)
        w1s.append(w1_blk.astype(jnp.bfloat16))
        w2s.append(w2cat.astype(jnp.bfloat16))
        gbs.append(jnp.stack([jnp.tile(p["gamma"], PACK),
                              jnp.tile(p["beta"], PACK)]).astype(jnp.float32))
    seg_inv = (seg_blk / jnp.float32(LATENT)).astype(jnp.bfloat16)  # 1/32 exact in bf16
    return dict(w1=jnp.stack(w1s), w2=jnp.stack(w2s),
                gb=jnp.stack(gbs), seg=seg_inv)


def embedder_forward(packed_params, grid_node_feats, mesh_node_feats,
                     mesh_edge_feats, g2m_edge_feats, m2g_edge_feats,
                     *, tr=ROW_TILE, out_dtype=jnp.float32):
    """Forward pass of Embedder: 5 independent MLPNet streams, one kernel.

    Each stream is padded only to its own tile multiple (no padding to the
    largest stream) and the tiles are concatenated into one ragged grid.
    """
    # TODO(synk): switch out_dtype to bf16 if downstream consumers accept it
    # (halves the dominant output HBM traffic); kept f32 to match the module.
    xs = (grid_node_feats, mesh_node_feats, mesh_edge_feats,
          g2m_edge_feats, m2g_edge_feats)
    blocks, tiles = [], []
    for x in xs:
        n, c = x.shape
        packed_rows = -(-n // PACK)                 # 4 logical rows per packed row
        t = -(-packed_rows // tr)                   # tiles for this stream
        rows_pad = t * tr * PACK
        xp = jnp.zeros((rows_pad, PC), jnp.float32).at[:n, :c].set(x)
        blocks.append(xp.reshape(t * tr, PACK * PC))  # free row-major reshape
        tiles.append(t)
    x_all = jnp.concatenate(blocks, axis=0)
    tile_sid = jnp.asarray(np.repeat(np.arange(len(xs), dtype=np.int32), tiles))

    out = fused_embedder(tile_sid, x_all,
                         packed_params["w1"], packed_params["w2"],
                         packed_params["gb"], packed_params["seg"],
                         tr=tr, out_dtype=out_dtype)
    out_rows = out.reshape(-1, LATENT)              # free row-major un-pack

    results, off = [], 0
    for x, t in zip(xs, tiles):
        results.append(out_rows[off: off + x.shape[0], :])
        off += t * tr * PACK
    return tuple(results)


# ----------------------------------------------------------------------------
# Reference + self-test
# ----------------------------------------------------------------------------

def _reference_mlp(x, p):
    h = x @ p["w1"]
    h = h * jax.nn.sigmoid(h)
    y = h @ p["w2"]
    mean = jnp.mean(y, axis=-1, keepdims=True)
    var = jnp.mean((y - mean) ** 2, axis=-1, keepdims=True)
    return (y - mean) / jnp.sqrt(var + LN_EPS) * p["gamma"] + p["beta"]


if __name__ == "__main__":
    key = jax.random.PRNGKey(0)
    # (in_channels, num_rows) per stream — small, deliberately skewed sizes.
    cfg = {
        "vg": (6, 72),     # grid node features
        "vm": (5, 16),     # mesh node features
        "em": (4, 24),     # mesh edge features
        "eg2m": (7, 40),   # grid->mesh edge features
        "em2g": (3, 10),   # mesh->grid edge features
    }
    TR_TEST = 8   # tiny row tile so several streams span multiple tiles
                  # (production uses ROW_TILE ~ 1k-4k depending on generation)

    keys = jax.random.split(key, 2 * len(cfg))
    params, inputs = {}, {}
    for i, (name, (cin, n)) in enumerate(cfg.items()):
        params[name] = init_mlp_params(keys[2 * i], cin, LATENT)
        inputs[name] = jax.random.normal(keys[2 * i + 1], (n, cin), jnp.float32)

    packed_params = pack_embedder_params([params[name] for name in cfg.keys()])

    fwd = jax.jit(lambda p, *xs: embedder_forward(p, *xs, tr=TR_TEST))
    outs = fwd(packed_params, inputs["vg"], inputs["vm"], inputs["em"],
               inputs["eg2m"], inputs["em2g"])
    outs = jax.block_until_ready(outs)

    # Verify against a plain-JAX f32 reference (bf16 matmuls -> loose tolerance).
    for (name, (cin, n)), o in zip(cfg.items(), outs):
        ref = _reference_mlp(inputs[name], params[name])
        assert o.shape == (n, LATENT), f"bad shape for {name}: {o.shape}"
        assert jnp.allclose(o, ref, atol=5e-2, rtol=5e-2), f"mismatch in {name}"

    print("KERNEL_OK")
</pallas_src>

<mosaic_0001>
module attributes {stable_mosaic.version = 11 : i64} {
  func.func @_fused_embedder_kernel(%arg0: i32, %arg1: memref<8xi32, #tpu.memory_space<smem>>, %arg2: memref<8x32xf32, #tpu.memory_space<vmem>>, %arg3: memref<1x32x128xbf16, #tpu.memory_space<vmem>>, %arg4: memref<1x128x256xbf16, #tpu.memory_space<vmem>>, %arg5: memref<1x2x128xf32, #tpu.memory_space<vmem>>, %arg6: memref<128x128xbf16, #tpu.memory_space<vmem>>, %arg7: memref<8x128xf32, #tpu.memory_space<vmem>>) attributes {dimension_semantics = [#tpu.dimension_semantics<parallel>], iteration_bounds = array<i64: 8>, scalar_prefetch = 1 : i64, scratch_operands = 0 : i64, tpu.core_type = #tpu.core_type<tc>, window_params = [{transform_indices = @transform_0, window_bounds = array<i64: 8, 32>}, {transform_indices = @transform_1, window_bounds = array<i64: 1, 32, 128>}, {transform_indices = @transform_2, window_bounds = array<i64: 1, 128, 256>}, {transform_indices = @transform_3, window_bounds = array<i64: 1, 2, 128>}, {pipeline_mode = #tpu.pipeline_mode<synchronous>, transform_indices = @transform_4, window_bounds = array<i64: 128, 128>}, {transform_indices = @transform_5, window_bounds = array<i64: 8, 128>}]} {
    %c0 = arith.constant 0 : index
    %c0_0 = arith.constant 0 : index
    %0 = vector.load %arg2[%c0, %c0_0] : memref<8x32xf32, #tpu.memory_space<vmem>>, vector<8x32xf32>
    %1 = arith.truncf %0 : vector<8x32xf32> to vector<8x32xbf16>
    %c0_1 = arith.constant 0 : index
    %c0_2 = arith.constant 0 : index
    %c0_3 = arith.constant 0 : index
    %2 = vector.load %arg3[%c0_1, %c0_2, %c0_3] : memref<1x32x128xbf16, #tpu.memory_space<vmem>>, vector<1x32x128xbf16>
    %3 = vector.shape_cast %2 : vector<1x32x128xbf16> to vector<32x128xbf16>
    %cst = arith.constant dense<0.000000e+00> : vector<8x128xf32>
    %4 = tpu.matmul %1, %3, %cst {dimension_numbers = #tpu.dot_dimension_numbers<[1], [0], [0], [1], [0, 0, 1, 1], [], []>} : vector<8x32xbf16>, vector<32x128xbf16>, vector<8x128xf32> -> vector<8x128xf32>
    %5 = arith.negf %4 : vector<8x128xf32>
    %6 = math.exp %5 : vector<8x128xf32>
    %cst_4 = arith.constant 1.000000e+00 : f32
    %7 = vector.broadcast %cst_4 : f32 to vector<8x128xf32>
    %8 = arith.addf %7, %6 : vector<8x128xf32>
    %9 = arith.divf %7, %8 : vector<8x128xf32>
    %10 = arith.mulf %4, %9 : vector<8x128xf32>
    %11 = arith.truncf %10 : vector<8x128xf32> to vector<8x128xbf16>
    %c0_5 = arith.constant 0 : index
    %c0_6 = arith.constant 0 : index
    %c0_7 = arith.constant 0 : index
    %12 = vector.load %arg4[%c0_5, %c0_6, %c0_7] : memref<1x128x256xbf16, #tpu.memory_space<vmem>>, vector<1x128x256xbf16>
    %13 = vector.shape_cast %12 : vector<1x128x256xbf16> to vector<128x256xbf16>
    %cst_8 = arith.constant dense<0.000000e+00> : vector<8x256xf32>
    %14 = tpu.matmul %11, %13, %cst_8 {dimension_numbers = #tpu.dot_dimension_numbers<[1], [0], [0], [1], [0, 0, 1, 1], [], []>} : vector<8x128xbf16>, vector<128x256xbf16>, vector<8x256xf32> -> vector<8x256xf32>
    %15 = vector.extract_strided_slice %14 {offsets = [0, 0], sizes = [8, 128], strides = [1, 1]} : vector<8x256xf32> to vector<8x128xf32>
    %16 = vector.extract_strided_slice %14 {offsets = [0, 128], sizes = [8, 128], strides = [1, 1]} : vector<8x256xf32> to vector<8x128xf32>
    %17 = arith.subf %15, %16 : vector<8x128xf32>
    %18 = arith.mulf %17, %17 : vector<8x128xf32>
    %19 = arith.truncf %18 : vector<8x128xf32> to vector<8x128xbf16>
    %c0_9 = arith.constant 0 : index
    %c0_10 = arith.constant 0 : index
    %20 = vector.load %arg6[%c0_9, %c0_10] : memref<128x128xbf16, #tpu.memory_space<vmem>>, vector<128x128xbf16>
    %cst_11 = arith.constant dense<0.000000e+00> : vector<8x128xf32>
    %21 = tpu.matmul %19, %20, %cst_11 {dimension_numbers = #tpu.dot_dimension_numbers<[1], [0], [0], [1], [0, 0, 1, 1], [], []>} : vector<8x128xbf16>, vector<128x128xbf16>, vector<8x128xf32> -> vector<8x128xf32>
    %cst_12 = arith.constant 9.99999974E-6 : f32
    %22 = vector.broadcast %cst_12 : f32 to vector<8x128xf32>
    %23 = arith.addf %21, %22 : vector<8x128xf32>
    %24 = math.rsqrt %23 : vector<8x128xf32>
    %25 = arith.mulf %17, %24 : vector<8x128xf32>
    %c0_13 = arith.constant 0 : index
    %c0_14 = arith.constant 0 : index
    %c0_15 = arith.constant 0 : index
    %26 = vector.load %arg5[%c0_13, %c0_14, %c0_15] : memref<1x2x128xf32, #tpu.memory_space<vmem>>, vector<1x2x128xf32>
    %27 = vector.shape_cast %26 : vector<1x2x128xf32> to vector<2x128xf32>
    %28 = vector.extract_strided_slice %27 {offsets = [0, 0], sizes = [1, 128], strides = [1, 1]} : vector<2x128xf32> to vector<1x128xf32>
    %29 = vector.broadcast %28 : vector<1x128xf32> to vector<8x128xf32>
    %30 = arith.mulf %25, %29 : vector<8x128xf32>
    %31 = vector.extract_strided_slice %27 {offsets = [1, 0], sizes = [1, 128], strides = [1, 1]} : vector<2x128xf32> to vector<1x128xf32>
    %32 = vector.broadcast %31 : vector<1x128xf32> to vector<8x128xf32>
    %33 = arith.addf %30, %32 : vector<8x128xf32>
    %c0_16 = arith.constant 0 : index
    %c0_17 = arith.constant 0 : index
    %34 = vector.load %arg7[%c0_16, %c0_17] : memref<8x128xf32, #tpu.memory_space<vmem>>, vector<8x128xf32>
    tpu.vector_store %arg7[%c0_16, %c0_17], %33 {strides = array<i32>} : memref<8x128xf32, #tpu.memory_space<vmem>>, vector<8x128xf32>,
    return
  }
  func.func @transform_0(%arg0: i32, %arg1: memref<8xi32, #tpu.memory_space<smem>>) -> (i32, i32) {
    %c0_i32 = arith.constant 0 : i32
    %c0_i32_0 = arith.constant 0 : i32
    return %arg0, %c0_i32 : i32, i32
  }
  func.func @transform_1(%arg0: i32, %arg1: memref<8xi32, #tpu.memory_space<smem>>) -> (i32, i32, i32) {
    %0 = arith.index_cast %arg0 : i32 to index
    %1 = memref.load %arg1[%0] : memref<8xi32, #tpu.memory_space<smem>>
    %c0_i32 = arith.constant 0 : i32
    %c0_i32_0 = arith.constant 0 : i32
    %c0_i32_1 = arith.constant 0 : i32
    return %1, %c0_i32, %c0_i32_0 : i32, i32, i32
  }
  func.func @transform_2(%arg0: i32, %arg1: memref<8xi32, #tpu.memory_space<smem>>) -> (i32, i32, i32) {
    %0 = arith.index_cast %arg0 : i32 to index
    %1 = memref.load %arg1[%0] : memref<8xi32, #tpu.memory_space<smem>>
    %c0_i32 = arith.constant 0 : i32
    %c0_i32_0 = arith.constant 0 : i32
    %c0_i32_1 = arith.constant 0 : i32
    return %1, %c0_i32, %c0_i32_0 : i32, i32, i32
  }
  func.func @transform_3(%arg0: i32, %arg1: memref<8xi32, #tpu.memory_space<smem>>) -> (i32, i32, i32) {
    %0 = arith.index_cast %arg0 : i32 to index
    %1 = memref.load %arg1[%0] : memref<8xi32, #tpu.memory_space<smem>>
    %c0_i32 = arith.constant 0 : i32
    %c0_i32_0 = arith.constant 0 : i32
    %c0_i32_1 = arith.constant 0 : i32
    return %1, %c0_i32, %c0_i32_0 : i32, i32, i32
  }
  func.func @transform_4(%arg0: i32, %arg1: memref<8xi32, #tpu.memory_space<smem>>) -> (i32, i32) {
    %c0_i32 = arith.constant 0 : i32
    %c0_i32_0 = arith.constant 0 : i32
    %c0_i32_1 = arith.constant 0 : i32
    return %c0_i32, %c0_i32_0 : i32, i32
  }
  func.func @transform_5(%arg0: i32, %arg1: memref<8xi32, #tpu.memory_space<smem>>) -> (i32, i32) {
    %c0_i32 = arith.constant 0 : i32
    %c0_i32_0 = arith.constant 0 : i32
    return %arg0, %c0_i32 : i32, i32
  }
}

</mosaic_0001>

<bundles_post_ra>
// kernel: _lambda_.1
= control target key start
LH: loop header
LB: loop body
LE: loop exit
PB: predicated region body
PF: predicated region fallthrough
CT: control target
= control target key end

     0   :  { %s1001_s0 = inlined_call_operand.vmem [shape: s32[8], index: 0, kind: input, shape index: {}]   ;;  %s1002_s1 = inlined_call_operand.vmem [shape: f32[64,32], index: 1, kind: input, shape index: {}]   ;;  %s1003_s2 = inlined_call_operand.vmem [shape: bf16[5,32,128], index: 2, kind: input, shape index: {}]   ;;  %s1004_s3 = inlined_call_operand.vmem [shape: bf16[5,128,256], index: 3, kind: input, shape index: {}]   ;;  %s1005_s4 = inlined_call_operand.vmem [shape: f32[5,2,128], index: 4, kind: input, shape index: {}]   ;;  %s1006_s5 = inlined_call_operand.vmem [shape: bf16[128,128], index: 5, kind: input, shape index: {}]   ;;  %s1007_s6 = inlined_call_operand.vmem [shape: f32[64,128], index: 6, kind: output, shape index: {}]  }
   0x1   :  { %s11_s23 = sshll.u32 %s1001_s0, 4  ;;  %s12_s23 = int_to_ptr.vmem [resolvable:$true] %s11_s23 }
   0x2   :  { %s859_s24 = scalar_lea.vmem %s12_s23, 16  ;;  %p864_p1 = scmp.lt.s32.totalorder %s12_s23, %s12_s23 }
   0x3   :  { %p860_p0 = scmp.ne.s32.totalorder %s12_s23, %s859_s24  ;;  %p865_p2 = scmp.lt.s32.totalorder %s859_s24, %s859_s24 }
   0x5   :  { %p866_p3 = por %p865_p2, %p864_p1 }
   0x7   :  { %p867_p4 = pnand %p866_p3, %p860_p0 }
   0x9   :  { %870 = shalt.err (!%p867_p4)  }
   0xa   :  { %s881_s25 = smov [#allocation3]  }
   0xb   :  { %14 = dma.vmem_to_smem %s12_s23, 16, %s881_s25, [#allocation2] }
   0xc   :  { %875 = dma.done.wait [#allocation2], 16 }
   0xd   :  { %876 = vsyncadd [#allocation2], 4294967280 }
   0xe   :  { %16 = sfence }
   0xf   :  { %s923_s26 = smov 0  }
  0x10 LB: > { %s929_s0 = sadd.s32 4294967295, %s879_s26   ;;  %p727_p5 = scmp.ge.s32.totalorder %s879_s26, 1  ;;  %s879_s26 = sphi %s923_s26, %s22_s26  }
  0x11   : > { %p234_p6 = scmp.lt.s32.totalorder %s879_s26, 9 }
  0x13   : > { %p235_p7 = pnand %p727_p5, %p234_p6 }
  0x14   : > { %s281_s27 = sld [smem:[#allocation3 + %s929_s0]] (!%p235_p7)  ;;  %p277_p8 = scmp.lt.s32.totalorder (!%p235_p7), %s929_s0, 7 }
  0x15   : > { %238 = sbr.rel (%p235_p7) target bundleno = 686 (0x2ae), region = 40  ;;  %s288_s13 = sld [smem:[#allocation3 + %s929_s0]] (!%p235_p7) }
  0x1a   : > { %v882_v0 = vmov 0.0   ;;  %vm883_vm0 = vmmov 0   ;;  %s939_s28 = scalar_select %p277_p8, %s929_s0, 7  ;;  %vm324_vm1 = vcmask 261120   ;;  %v884_v21 = vmov 0   ;;  %v845_v22 = vld [vmem:[%s1006_s5 + $0x38] sm:$0xff]  }
  0x1b   : > { %779 = vmatprep.subr.bf16.mxu0 %v882_v0  ;;  %783 = vmatprep.mubr.msk.bf16.mxu0 %vm883_vm0, %v882_v0  ;;  %p282_p9 = scmp.lt.s32.totalorder %s281_s27, 4  ;;  %p289_p10 = scmp.lt.s32.totalorder %s288_s13, 4  ;;  %v846_v23 = vld [vmem:[%s1006_s5 + $0x30] sm:$0xff]   ;;  %v847_v24 = vld [vmem:[%s1006_s5 + $0x28] sm:$0xff]   ;;  %v848_v25 = vld [vmem:[%s1006_s5 + $0x20] sm:$0xff]   ;;  %v623_v50 = vlaneseq }
  0x1c   : > { %s728_s29 = sshll.u32 %s939_s28, 3  ;;  %504 = vmatprep.mubr.bf16.mxu1 %v884_v21  ;;  %v849_v26 = vld [vmem:[%s1006_s5 + $0x18] sm:$0xff]   ;;  %v850_v27 = vld [vmem:[%s1006_s5 + $0x10] sm:$0xff]   ;;  %v851_v38 = vld [vmem:[%s1006_s5 + $0x8] sm:$0xff]  }
  0x1d   : > { %s1009_s27 = smov (!%p282_p9, %s281_s27), 4  ;;  %s280_s12 = scalar_lea.vmem %s1002_s1, %s728_s29  ;;  %v852_v39 = vld [vmem:[%s1006_s5] sm:$0xff]   ;;  %v624_v53 = vshrl.u32 %v623_v50, 7 }
  0x1e   : > { %s765_s30 = sshll.u32 %s1009_s27, 4  ;;  %v306_v3 = vld [vmem:[%s280_s12] sm:$0xff]  ;;  %s1011_s13 = smov (!%p289_p10, %s288_s13), 4 }
  0x1f   : > { %s286_s9 = scalar_lea.vmem %s1003_s2, %s765_s30  ;;  %v307_v4 = vpack.c.bf16 %v306_v3, %v306_v3  ;;  %s766_s14 = sshll.u32 %s1011_s13, 7  ;;  %v625_v54 = vsub.s32 0, %v624_v53  ;;  %v630_v56 = vsub.s32 1, %v624_v53 }
  0x20   : > { %v819_v1 = vld [vmem:[%s286_s9 + $0x8] sm:$0xff]   ;;  %v820_v2 = vld [vmem:[%s286_s9] sm:$0xff]   ;;  %s293_s17 = scalar_lea.vmem %s1004_s3, %s766_s14  ;;  %s295_s13 = sld [smem:[#allocation3 + %s929_s0]] }
  0x21   : > { %780 = vmatpush3.bf16.msra.mxu0 %v819_v1  ;;  %v821_v5 = vld [vmem:[%s293_s17 + $0x74] ss:$8 sps:$4 sm:$0xff]   ;;  %v823_v6 = vld [vmem:[%s293_s17 + $0x70] ss:$8 sps:$4 sm:$0xff]   ;;  %v824_v7 = vld [vmem:[%s293_s17 + $0x64] ss:$8 sps:$4 sm:$0xff]   ;;  %s304_s19 = scalar_lea.vmem %s1007_s6, %s728_s29 }
  0x22   : > { %781 = vmatprep.subr.bf16.mxu0 %v882_v0  ;;  %472 = vmatprep.subr.bf16.mxu1 %v821_v5  ;;  %v826_v8 = vld [vmem:[%s293_s17 + $0x60] ss:$8 sps:$4 sm:$0xff]   ;;  %v827_v9 = vld [vmem:[%s293_s17 + $0x54] ss:$8 sps:$4 sm:$0xff]   ;;  %v829_v10 = vld [vmem:[%s293_s17 + $0x50] ss:$8 sps:$4 sm:$0xff]  }
  0x23   : > { %473 = vmatpush1.bf16.msra.mxu1 %v823_v6  ;;  %v830_v11 = vld [vmem:[%s293_s17 + $0x44] ss:$8 sps:$4 sm:$0xff]   ;;  %v832_v12 = vld [vmem:[%s293_s17 + $0x40] ss:$8 sps:$4 sm:$0xff]   ;;  %v833_v13 = vld [vmem:[%s293_s17 + $0x34] ss:$8 sps:$4 sm:$0xff]  }
  0x24   : > { %474 = vmatprep.subr.bf16.mxu1 %v824_v7  ;;  %v835_v14 = vld [vmem:[%s293_s17 + $0x30] ss:$8 sps:$4 sm:$0xff]   ;;  %v836_v15 = vld [vmem:[%s293_s17 + $0x24] ss:$8 sps:$4 sm:$0xff]   ;;  %v838_v16 = vld [vmem:[%s293_s17 + $0x20] ss:$8 sps:$4 sm:$0xff]  }
  0x25   : > { %782 = vmatpush3.bf16.msra.mxu0 %v820_v2  ;;  %v839_v17 = vld [vmem:[%s293_s17 + $0x14] ss:$8 sps:$4 sm:$0xff]   ;;  %v841_v18 = vld [vmem:[%s293_s17 + $0x10] ss:$8 sps:$4 sm:$0xff]   ;;  %v842_v19 = vld [vmem:[%s293_s17 + $0x4] ss:$8 sps:$4 sm:$0xff]  }
  0x26   : > { %787 = vmatprep.subr.bf16.mxu0 %v882_v0  ;;  %v844_v20 = vld [vmem:[%s293_s17] ss:$8 sps:$4 sm:$0xff]   ;;  %p296_p11 = scmp.lt.s32.totalorder %s295_s13, 4 }
  0x27   : > { %475 = vmatpush1.bf16.msra.mxu1 %v826_v8 }
  0x28   : > { %784 = vmatmul.mubr.msk.bf16.vlgmr.msra.gmra.mxu0 %vm324_vm1, %v307_v4  ;;  %476 = vmatprep.subr.bf16.mxu1 %v827_v9  ;;  %s1013_s13 = smov (!%p296_p11, %s295_s13), 4 }
  0x29   : > { %803 = vmatprep.mubr.msk.bf16.mxu0 %vm883_vm0, %v882_v0  ;;  %788 = vmatpush3.bf16.msra.mxu0 %v845_v22  ;;  %s733_s14 = sshll.u32 %s1013_s13, 1 }
  0x2a   : > { %789 = vmatprep.subr.bf16.mxu0 %v882_v0  ;;  %s299_s17 = scalar_lea.vmem %s1005_s4, %s733_s14 }
  0x2b   : > { %477 = vmatpush1.bf16.msra.mxu1 %v829_v10  ;;  %v622_v55 = vld [vmem:[%s299_s17] sm:$0x3] }
  0x2c   : > { %478 = vmatprep.subr.bf16.mxu1 %v830_v11  ;;  %v626_v57 = vrot.slane %v622_v55, %v625_v54  ;;  %v631_v60 = vrot.slane %v622_v55, %v630_v56 }
  0x2d   : > { %790 = vmatpush3.bf16.msra.mxu0 %v846_v23 }
  0x2e   : > { %791 = vmatprep.subr.bf16.mxu0 %v882_v0 }
  0x2f   : > { %479 = vmatpush1.bf16.msra.mxu1 %v832_v12 }
  0x30   : > { %480 = vmatprep.subr.bf16.mxu1 %v833_v13 }
  0x31   : > { %792 = vmatpush3.bf16.msra.mxu0 %v847_v24 }
  0x32   : > { %793 = vmatprep.subr.bf16.mxu0 %v882_v0 }
  0x33   : > { %481 = vmatpush1.bf16.msra.mxu1 %v835_v14 }
  0x34   : > { %482 = vmatprep.subr.bf16.mxu1 %v836_v15 }
  0x35   : > { %794 = vmatpush3.bf16.msra.mxu0 %v848_v25 }
  0x36   : > { %795 = vmatprep.subr.bf16.mxu0 %v882_v0 }
  0x37   : > { %483 = vmatpush1.bf16.msra.mxu1 %v838_v16 }
  0x38   : > { %484 = vmatprep.subr.bf16.mxu1 %v839_v17 }
  0x39   : > { %796 = vmatpush3.bf16.msra.mxu0 %v849_v26 }
  0x3a   : > { %797 = vmatprep.subr.bf16.mxu0 %v882_v0 }
  0x3b   : > { %485 = vmatpush1.bf16.msra.mxu1 %v841_v18 }
  0x3c   : > { %486 = vmatprep.subr.bf16.mxu1 %v842_v19 }
  0x3d   : > { %798 = vmatpush3.bf16.msra.mxu0 %v850_v27 }
  0x3e   : > { %799 = vmatprep.subr.bf16.mxu0 %v882_v0 }
  0x3f   : > { %487 = vmatpush1.bf16.msra.mxu1 %v844_v20 }
  0x41   : > { %800 = vmatpush3.bf16.msra.mxu0 %v851_v38 }
  0x42   : > { %801 = vmatprep.subr.bf16.mxu0 %v882_v0 }
  0x45   : > { %802 = vmatpush3.bf16.msra.mxu0 %v852_v39 }
  0xe8   : > { %v362_v28 = vpop.f32.mrf.mxu0 }
  0xe9   : > { %v738_v29 = vmul.f32 -1.442695, %v362_v28 }
  0xea   : > { %v785_v30 = vpop.f32.mrf.mxu0 }
  0xeb   : > { %853 = vpow2.f32 %v738_v29 }
  0xec   : > { %v365_v31 = vpop.f32.mrf.mxu0 }
  0xee   : > { %v786_v32 = vpop.f32.mrf.mxu0 }
  0xf8   : > { %v854_v33 = vpop.eup %853 }
  0xf9   : > { %v371_v34 = vadd.f32 1.0, %v854_v33 }
  0xfb   : > { %855 = vrcp.f32 %v371_v34 }
 0x108   : > { %v856_v35 = vpop.eup %855 }
 0x109   : > { %v374_v36 = vmul.f32 %v856_v35, %v362_v28 }
 0x10b   : > { %v375_v37 = vpack.c.bf16 %v374_v36, %v374_v36 }
 0x10d   : > { %505 = vmatmul.mubr.bf16.vlgmr.msra.gmra.mxu1 %v375_v37 }
 0x1cd   : > { %v506_v40 = vpop.f32.mrf.mxu1 }
 0x1cf   : > { %v508_v41 = vpop.f32.mrf.mxu1 }
 0x1d0   : > { %v513_v42 = vsub.f32 %v506_v40, %v508_v41 }
 0x1d1   : > { %v510_v43 = vpop.f32.mrf.mxu1 }
 0x1d2   : > { %v514_v44 = vmul.f32 %v513_v42, %v513_v42 }
 0x1d3   : > { %v511_v45 = vpop.f32.mrf.mxu1 }
 0x1d4   : > { %v515_v46 = vpack.c.bf16 %v514_v44, %v514_v44 }
 0x1d6   : > { %804 = vmatmul.mubr.bf16.vlgmr.msra.gmra.mxu0 %v515_v46 }
 0x296   : > { %v614_v47 = vpop.f32.mrf.mxu0 }
 0x297   : > { %v615_v48 = vadd.f32 1e-05, %v614_v47 }
 0x298   : > { %v805_v49 = vpop.f32.mrf.mxu0 }
 0x299   : > { %857 = vrsqrt.f32 %v615_v48 }
 0x29a   : > { %v617_v51 = vpop.f32.mrf.mxu0 }
 0x29c   : > { %v806_v52 = vpop.f32.mrf.mxu0 }
 0x2a6   : > { %v858_v58 = vpop.eup %857 }
 0x2a7   : > { %v621_v59 = vmul.f32 %v858_v58, %v513_v42 }
 0x2a9   : > { %v627_v61 = vmul.f32 %v626_v57, %v621_v59 }
 0x2ab   : > { %v632_v62 = vadd.f32 %v631_v60, %v627_v61 }
 0x2ad   : > { %633 = vst [vmem:[%s304_s19] sm:$0xff] %v632_v62 }
 0x2ae PF: > { %s22_s26 = sadd.s32 1, %s879_s26  }
 0x2af   : > { %p19_p12 = scmp.ge.s32.totalorder %s22_s26, 10  }
 0x2b1   :  { %21 = sbr.rel (!%p19_p12) target bundleno = 16 (0x10), region = 79 }

</bundles_post_ra>
